<compile_context>
chip_gen: v5e
topology: v5e:2x2
jax: 0.10.0
libtpu: 0.0.40
codegen_flags: <defaults>
</compile_context>

<pallas_src>
import functools

import jax
import jax.numpy as jnp
from jax.experimental import pallas as pl
from jax.experimental.pallas import tpu as pltpu


# ---------------------------------------------------------------------------
# Kernel: fused  out = (SiLU(x @ W1x + td * W1t + b1)) @ W2 + b2
# ---------------------------------------------------------------------------
def _cond_mlp_kernel(x_ref, td_ref, w1x_ref, w1t_ref, b1_ref, w2_ref, b2_ref, o_ref):
    # x_ref  : (TN, C)    token features
    # td_ref : (TN, 1)    per-token temporal distance (the "concatenated" feature)
    # w1x_ref: (C, HID)   first Linear, weight rows for the C token features
    # w1t_ref: (1, HID)   first Linear, weight row for the td feature
    # b1_ref : (1, HID)
    # w2_ref : (HID, C)   second Linear
    # b2_ref : (1, C)
    # o_ref  : (TN, C)
    h = jnp.dot(x_ref[...], w1x_ref[...], preferred_element_type=jnp.float32)
    h = h + td_ref[...] * w1t_ref[...] + b1_ref[...]
    h = h * jax.nn.sigmoid(h)  # SiLU
    y = jnp.dot(h, w2_ref[...], preferred_element_type=jnp.float32)
    o_ref[...] = (y + b2_ref[...]).astype(o_ref.dtype)


def _fused_cond_mlp(tokens, td, w1, b1, w2, b2, *, tile_n=256):
    """tokens: (N, C) f32, td: (N, 1) f32 -> (N, C) f32 = fc(concat(tokens, td))."""
    N, C = tokens.shape
    HID = w1.shape[-1]

    # Split the first Linear so the concat never materializes.
    w1x = w1[:C, :]              # (C, HID)
    w1t = w1[C:C + 1, :]         # (1, HID)
    b1r = b1.reshape(1, HID)
    b2r = b2.reshape(1, C)

    # Token tile: multiple of 8 sublanes, sized well under scoped VMEM even on
    # v7x (TN * (C + HID) * 4B * 2 buffers is tiny for tile_n=256).
    tn = min(tile_n, max(8, -(-N // 8) * 8))
    n_pad = -(-N // tn) * tn
    if n_pad != N:
        tokens = jnp.pad(tokens, ((0, n_pad - N), (0, 0)))
        td = jnp.pad(td, ((0, n_pad - N), (0, 0)))

    out = pl.pallas_call(
        _cond_mlp_kernel,
        out_shape=jax.ShapeDtypeStruct((n_pad, C), jnp.float32),
        grid=(n_pad // tn,),
        in_specs=[
            pl.BlockSpec((tn, C), lambda i: (i, 0)),      # x tile
            pl.BlockSpec((tn, 1), lambda i: (i, 0)),      # td tile
            pl.BlockSpec((C, HID), lambda i: (0, 0)),     # W1x (resident)
            pl.BlockSpec((1, HID), lambda i: (0, 0)),     # W1t (resident)
            pl.BlockSpec((1, HID), lambda i: (0, 0)),     # b1  (resident)
            pl.BlockSpec((HID, C), lambda i: (0, 0)),     # W2  (resident)
            pl.BlockSpec((1, C), lambda i: (0, 0)),       # b2  (resident)
        ],
        out_specs=pl.BlockSpec((tn, C), lambda i: (i, 0)),
        compiler_params=pltpu.CompilerParams(
            dimension_semantics=("parallel",),            # shard token tiles across TCs
        ),
    )(tokens, td, w1x, w1t, b1r, w2, b2r)
    return out[:N]


# ---------------------------------------------------------------------------
# Module forward
# ---------------------------------------------------------------------------
def temporal_condition_forward(x, temporal_distance, params, *,
                               spatial=True, temporal=True, tile_n=256):
    """x: (B, C, T, H, W); temporal_distance: (B,) or None; params = (w1,b1,w2,b2)
    with w1: (C+1, HID), b1: (HID,), w2: (HID, C), b2: (C,)."""
    if not (spatial or temporal):
        raise ValueError("At least one of spatial or temporal must be True")
    if temporal_distance is None:
        return x

    B, C, T, H, W = x.shape
    w1, b1, w2, b2 = params

    # Flatten to per-token rows (any consistent order; fc is pointwise per token).
    tokens = jnp.transpose(x, (0, 2, 3, 4, 1)).reshape(B * T * H * W, C)
    tokens = tokens.astype(jnp.float32)
    td = jnp.broadcast_to(
        temporal_distance.astype(jnp.float32).reshape(B, 1, 1, 1), (B, T, H, W)
    ).reshape(B * T * H * W, 1)

    # The spatial and temporal branches apply the same fc to every token; if
    # both flags are set the module applies it twice sequentially.
    for _ in range(int(spatial) + int(temporal)):
        tokens = _fused_cond_mlp(tokens, td, w1, b1, w2, b2, tile_n=tile_n)

    out = tokens.reshape(B, T, H, W, C).transpose(0, 4, 1, 2, 3)
    return out.astype(x.dtype)


# ---------------------------------------------------------------------------
# Pure-JAX reference that mirrors the PyTorch module literally (with rearranges
# and the explicit concat), used only for correctness checking.
# ---------------------------------------------------------------------------
def _reference(x, temporal_distance, params, *, spatial=True, temporal=True):
    if temporal_distance is None:
        return x
    B, C, T, H, W = x.shape
    w1, b1, w2, b2 = params

    def fc(tok):
        h = jnp.dot(tok, w1, preferred_element_type=jnp.float32) + b1
        h = h * jax.nn.sigmoid(h)
        return jnp.dot(h, w2, preferred_element_type=jnp.float32) + b2

    td = temporal_distance.astype(jnp.float32)
    out = x.astype(jnp.float32)
    if spatial:
        t = jnp.transpose(out, (0, 2, 3, 4, 1)).reshape(B * T, H * W, C)
        tdr = jnp.broadcast_to(td.reshape(B, 1, 1, 1), (B, T, H * W, 1)).reshape(B * T, H * W, 1)
        t = fc(jnp.concatenate([t, tdr], axis=-1))
        out = t.reshape(B, T, H, W, C).transpose(0, 4, 1, 2, 3)
    if temporal:
        t = jnp.transpose(out, (0, 3, 4, 2, 1)).reshape(B * H * W, T, C)
        tdr = jnp.broadcast_to(td.reshape(B, 1, 1, 1), (B, H, W, T)).reshape(B * H * W, T, 1)
        t = fc(jnp.concatenate([t, tdr], axis=-1))
        out = jnp.transpose(t.reshape(B, H, W, T, C), (0, 4, 3, 1, 2))
    return out.astype(x.dtype)


if __name__ == "__main__":
    key = jax.random.PRNGKey(0)
    k1, k2, k3, k4, kx, kt = jax.random.split(key, 6)

    # Small shapes consistent with the module: dim=C=32, mlp_ratio=4 -> hidden=128
    B, C, T, H, W = 2, 32, 2, 4, 4
    HID = int(C * 4.0)

    w1 = jax.random.normal(k1, (C + 1, HID), jnp.float32) / jnp.sqrt(C + 1.0)
    b1 = jax.random.normal(k2, (HID,), jnp.float32) * 0.01
    w2 = jax.random.normal(k3, (HID, C), jnp.float32) / jnp.sqrt(float(HID))
    b2 = jax.random.normal(k4, (C,), jnp.float32) * 0.01
    params = (w1, b1, w2, b2)

    x = jax.random.normal(kx, (B, C, T, H, W), jnp.float32)
    temporal_distance = jax.random.uniform(kt, (B,), jnp.float32, minval=-4.0, maxval=4.0)

    # spatial=True, temporal=True (fc applied twice, shared weights), small tile
    # so the test exercises a multi-step "parallel" grid.
    out = temporal_condition_forward(x, temporal_distance, params,
                                     spatial=True, temporal=True, tile_n=32)
    out = jax.block_until_ready(out)

    ref = _reference(x, temporal_distance, params, spatial=True, temporal=True)
    assert out.shape == (B, C, T, H, W)
    assert jnp.allclose(out, ref, atol=2e-3, rtol=2e-3), "mismatch vs reference"

    # temporal_distance=None path: module returns x unchanged.
    out_none = temporal_condition_forward(x, None, params)
    assert jnp.array_equal(out_none, x)

    print("KERNEL_OK")
</pallas_src>

<mosaic_0001>
module attributes {stable_mosaic.version = 11 : i64} {
  func.func @_cond_mlp_kernel(%arg0: i32, %arg1: memref<32x32xf32, #tpu.memory_space<vmem>>, %arg2: memref<32x1xf32, #tpu.memory_space<vmem>>, %arg3: memref<32x128xf32, #tpu.memory_space<vmem>>, %arg4: memref<1x128xf32, #tpu.memory_space<vmem>>, %arg5: memref<1x128xf32, #tpu.memory_space<vmem>>, %arg6: memref<128x32xf32, #tpu.memory_space<vmem>>, %arg7: memref<1x32xf32, #tpu.memory_space<vmem>>, %arg8: memref<32x32xf32, #tpu.memory_space<vmem>>) attributes {dimension_semantics = [#tpu.dimension_semantics<parallel>], iteration_bounds = array<i64: 2>, scalar_prefetch = 0 : i64, scratch_operands = 0 : i64, tpu.core_type = #tpu.core_type<tc>, window_params = [{transform_indices = @transform_0, window_bounds = array<i64: 32, 32>}, {transform_indices = @transform_1, window_bounds = array<i64: 32, 1>}, {pipeline_mode = #tpu.pipeline_mode<synchronous>, transform_indices = @transform_2, window_bounds = array<i64: 32, 128>}, {pipeline_mode = #tpu.pipeline_mode<synchronous>, transform_indices = @transform_3, window_bounds = array<i64: 1, 128>}, {pipeline_mode = #tpu.pipeline_mode<synchronous>, transform_indices = @transform_4, window_bounds = array<i64: 1, 128>}, {pipeline_mode = #tpu.pipeline_mode<synchronous>, transform_indices = @transform_5, window_bounds = array<i64: 128, 32>}, {pipeline_mode = #tpu.pipeline_mode<synchronous>, transform_indices = @transform_6, window_bounds = array<i64: 1, 32>}, {transform_indices = @transform_7, window_bounds = array<i64: 32, 32>}]} {
    %c0 = arith.constant 0 : index
    %c0_0 = arith.constant 0 : index
    %0 = vector.load %arg1[%c0, %c0_0] : memref<32x32xf32, #tpu.memory_space<vmem>>, vector<32x32xf32>
    %c0_1 = arith.constant 0 : index
    %c0_2 = arith.constant 0 : index
    %1 = vector.load %arg3[%c0_1, %c0_2] : memref<32x128xf32, #tpu.memory_space<vmem>>, vector<32x128xf32>
    %cst = arith.constant dense<0.000000e+00> : vector<32x128xf32>
    %2 = tpu.matmul %0, %1, %cst {dimension_numbers = #tpu.dot_dimension_numbers<[1], [0], [0], [1], [0, 0, 1, 1], [], []>} : vector<32x32xf32>, vector<32x128xf32>, vector<32x128xf32> -> vector<32x128xf32>
    %c0_3 = arith.constant 0 : index
    %c0_4 = arith.constant 0 : index
    %3 = vector.load %arg2[%c0_3, %c0_4] : memref<32x1xf32, #tpu.memory_space<vmem>>, vector<32x1xf32>
    %c0_5 = arith.constant 0 : index
    %c0_6 = arith.constant 0 : index
    %4 = vector.load %arg4[%c0_5, %c0_6] : memref<1x128xf32, #tpu.memory_space<vmem>>, vector<1x128xf32>
    %5 = vector.broadcast %3 : vector<32x1xf32> to vector<32x128xf32>
    %6 = vector.broadcast %4 : vector<1x128xf32> to vector<32x128xf32>
    %7 = arith.mulf %5, %6 : vector<32x128xf32>
    %8 = arith.addf %2, %7 : vector<32x128xf32>
    %c0_7 = arith.constant 0 : index
    %c0_8 = arith.constant 0 : index
    %9 = vector.load %arg5[%c0_7, %c0_8] : memref<1x128xf32, #tpu.memory_space<vmem>>, vector<1x128xf32>
    %10 = vector.broadcast %9 : vector<1x128xf32> to vector<32x128xf32>
    %11 = arith.addf %8, %10 : vector<32x128xf32>
    %12 = arith.negf %11 : vector<32x128xf32>
    %13 = math.exp %12 : vector<32x128xf32>
    %cst_9 = arith.constant 1.000000e+00 : f32
    %14 = vector.broadcast %cst_9 : f32 to vector<32x128xf32>
    %15 = arith.addf %14, %13 : vector<32x128xf32>
    %16 = arith.divf %14, %15 : vector<32x128xf32>
    %17 = arith.mulf %11, %16 : vector<32x128xf32>
    %c0_10 = arith.constant 0 : index
    %c0_11 = arith.constant 0 : index
    %18 = vector.load %arg6[%c0_10, %c0_11] : memref<128x32xf32, #tpu.memory_space<vmem>>, vector<128x32xf32>
    %cst_12 = arith.constant dense<0.000000e+00> : vector<32x32xf32>
    %19 = tpu.matmul %17, %18, %cst_12 {dimension_numbers = #tpu.dot_dimension_numbers<[1], [0], [0], [1], [0, 0, 1, 1], [], []>} : vector<32x128xf32>, vector<128x32xf32>, vector<32x32xf32> -> vector<32x32xf32>
    %c0_13 = arith.constant 0 : index
    %c0_14 = arith.constant 0 : index
    %20 = vector.load %arg7[%c0_13, %c0_14] : memref<1x32xf32, #tpu.memory_space<vmem>>, vector<1x32xf32>
    %21 = vector.broadcast %20 : vector<1x32xf32> to vector<32x32xf32>
    %22 = arith.addf %19, %21 : vector<32x32xf32>
    %c0_15 = arith.constant 0 : index
    %c0_16 = arith.constant 0 : index
    %23 = vector.load %arg8[%c0_15, %c0_16] : memref<32x32xf32, #tpu.memory_space<vmem>>, vector<32x32xf32>
    tpu.vector_store %arg8[%c0_15, %c0_16], %22 {strides = array<i32>} : memref<32x32xf32, #tpu.memory_space<vmem>>, vector<32x32xf32>,
    return
  }
  func.func @transform_0(%arg0: i32) -> (i32, i32) {
    %c0_i32 = arith.constant 0 : i32
    %c0_i32_0 = arith.constant 0 : i32
    return %arg0, %c0_i32 : i32, i32
  }
  func.func @transform_1(%arg0: i32) -> (i32, i32) {
    %c0_i32 = arith.constant 0 : i32
    %c0_i32_0 = arith.constant 0 : i32
    return %arg0, %c0_i32 : i32, i32
  }
  func.func @transform_2(%arg0: i32) -> (i32, i32) {
    %c0_i32 = arith.constant 0 : i32
    %c0_i32_0 = arith.constant 0 : i32
    %c0_i32_1 = arith.constant 0 : i32
    return %c0_i32, %c0_i32_0 : i32, i32
  }
  func.func @transform_3(%arg0: i32) -> (i32, i32) {
    %c0_i32 = arith.constant 0 : i32
    %c0_i32_0 = arith.constant 0 : i32
    %c0_i32_1 = arith.constant 0 : i32
    return %c0_i32, %c0_i32_0 : i32, i32
  }
  func.func @transform_4(%arg0: i32) -> (i32, i32) {
    %c0_i32 = arith.constant 0 : i32
    %c0_i32_0 = arith.constant 0 : i32
    %c0_i32_1 = arith.constant 0 : i32
    return %c0_i32, %c0_i32_0 : i32, i32
  }
  func.func @transform_5(%arg0: i32) -> (i32, i32) {
    %c0_i32 = arith.constant 0 : i32
    %c0_i32_0 = arith.constant 0 : i32
    %c0_i32_1 = arith.constant 0 : i32
    return %c0_i32, %c0_i32_0 : i32, i32
  }
  func.func @transform_6(%arg0: i32) -> (i32, i32) {
    %c0_i32 = arith.constant 0 : i32
    %c0_i32_0 = arith.constant 0 : i32
    %c0_i32_1 = arith.constant 0 : i32
    return %c0_i32, %c0_i32_0 : i32, i32
  }
  func.func @transform_7(%arg0: i32) -> (i32, i32) {
    %c0_i32 = arith.constant 0 : i32
    %c0_i32_0 = arith.constant 0 : i32
    return %arg0, %c0_i32 : i32, i32
  }
}

</mosaic_0001>

<bundles_post_ra>
// kernel: tpu_custom_call.1
= control target key start
LH: loop header
LB: loop body
LE: loop exit
PB: predicated region body
PF: predicated region fallthrough
CT: control target
= control target key end

     0   :  { %s727_s24 = smov 0   ;;  %s837_s0 = inlined_call_operand.vmem [shape: f32[64,32], index: 0, kind: input, shape index: {}]   ;;  %s838_s1 = inlined_call_operand.vmem [shape: f32[64,1], index: 1, kind: input, shape index: {}]   ;;  %s839_s2 = inlined_call_operand.vmem [shape: f32[32,128], index: 2, kind: input, shape index: {}]   ;;  %s840_s3 = inlined_call_operand.vmem [shape: f32[1,128], index: 3, kind: input, shape index: {}]   ;;  %s841_s4 = inlined_call_operand.vmem [shape: f32[1,128], index: 4, kind: input, shape index: {}]   ;;  %s842_s5 = inlined_call_operand.vmem [shape: f32[128,32], index: 5, kind: input, shape index: {}]   ;;  %s843_s6 = inlined_call_operand.vmem [shape: f32[1,32], index: 6, kind: input, shape index: {}]   ;;  %s844_s7 = inlined_call_operand.vmem [shape: f32[64,32], index: 7, kind: output, shape index: {}]  }
   0x1 LB: > { %s595_s25 = sadd.s32 4294967295, %s684_s24   ;;  %p599_p0 = scmp.ge.s32.totalorder %s684_s24, 1  ;;  %s684_s24 = sphi %s727_s24, %s17_s24  }
   0x2   : > { %p249_p1 = scmp.lt.s32.totalorder %s684_s24, 3 }
   0x4   : > { %p250_p2 = pnand %p599_p0, %p249_p1 }
   0x5   : > { %s600_s30 = sshll.u32 (!%p250_p2), %s595_s25, 2 }
   0x6   : > { %253 = sbr.rel (%p250_p2) target bundleno = 338 (0x152), region = 48  ;;  %p287_p3 = scmp.lt.s32.totalorder (!%p250_p2), %s600_s30, 7 }
   0xb   : > { %v311_v0 = vld [vmem:[%s839_s2 + $0x18] sm:$0xff]  ;;  %v310_v1 = vld [vmem:[%s839_s2 + $0x10] sm:$0xff]  ;;  %v686_v2 = vmov 0   ;;  %v309_v3 = vld [vmem:[%s839_s2 + $0x8] sm:$0xff]  ;;  %s846_s30 = smov (!%p287_p3, %s600_s30), 7  ;;  %vm344_vm0 = vcmask 261120  }
   0xc   : > { %369 = vmatpush.msra.mxu0 %v311_v0  ;;  %658 = vset.pattern.permute.xlu1 %v686_v2  ;;  %v308_v4 = vld [vmem:[%s839_s2] sm:$0xff]  ;;  %s747_s12 = sshll.u32 %s846_s30, 3  ;;  %v489_v13 = vld [vmem:[%s842_s5 + $0x78] sm:$0xff]  ;;  %v488_v14 = vld [vmem:[%s842_s5 + $0x70] sm:$0xff] }
   0xd   : > { %657 = vset.pattern.permute.xlu0 %v686_v2  ;;  %s290_s15 = scalar_lea.vmem %s837_s0, %s747_s12  ;;  %s296_s18 = scalar_lea.vmem %s838_s1, %s747_s12  ;;  %494 = vmatpush.msra.mxu1 %v489_v13  ;;  %v487_v15 = vld [vmem:[%s842_s5 + $0x68] sm:$0xff]  ;;  %v486_v16 = vld [vmem:[%s842_s5 + $0x60] sm:$0xff]  ;;  %v485_v17 = vld [vmem:[%s842_s5 + $0x58] sm:$0xff] }
   0xe   : > { %370 = vmatpush.msra.mxu0 %v310_v1  ;;  %v304_v5 = vld [vmem:[%s290_s15] sm:$0xff]  ;;  %v315_v6 = vld [vmem:[%s296_s18 + $0x18] sm:$0xff]  ;;  %v314_v7 = vld [vmem:[%s296_s18 + $0x10] sm:$0xff]  ;;  %616 = vmatpush.msra.mxu2 %v489_v13  ;;  %s302_s17 = scalar_lea.vmem %s844_s7, %s747_s12 }
   0xf   : > { %334 = vperm.xlu1 %658, %v315_v6   ;;  %329 = vperm.xlu0 %657, %v314_v7   ;;  %v305_v8 = vld [vmem:[%s290_s15 + $0x8] sm:$0xff]  ;;  %v312_v9 = vld [vmem:[%s296_s18] sm:$0xff]  ;;  %v306_v11 = vld [vmem:[%s290_s15 + $0x10] sm:$0xff] }
  0x10   : > { %371 = vmatpush.msra.mxu0 %v309_v3  ;;  %v313_v10 = vld [vmem:[%s296_s18 + $0x8] sm:$0xff]  ;;  %v307_v12 = vld [vmem:[%s290_s15 + $0x18] sm:$0xff]  ;;  %617 = vmatpush.msra.mxu3 %v489_v13  ;;  %v484_v18 = vld [vmem:[%s842_s5 + $0x50] sm:$0xff] }
  0x11   : > { %495 = vmatpush.msra.mxu1 %v488_v14  ;;  %618 = vmatpush.msra.mxu2 %v488_v14  ;;  %v483_v19 = vld [vmem:[%s842_s5 + $0x48] sm:$0xff]  ;;  %v482_v20 = vld [vmem:[%s842_s5 + $0x40] sm:$0xff]  ;;  %v481_v21 = vld [vmem:[%s842_s5 + $0x38] sm:$0xff] }
  0x12   : > { %372 = vmatpush.msra.mxu0 %v308_v4  ;;  %619 = vmatpush.msra.mxu3 %v488_v14  ;;  %v480_v23 = vld [vmem:[%s842_s5 + $0x30] sm:$0xff]  ;;  %v479_v24 = vld [vmem:[%s842_s5 + $0x28] sm:$0xff]  ;;  %v478_v26 = vld [vmem:[%s842_s5 + $0x20] sm:$0xff] }
  0x13   : > { %606 = vmatmul.msk.f32.vlgmr.msra.gmra.mxu0 %vm344_vm0, %v304_v5  ;;  %496 = vmatpush.msra.mxu1 %v487_v15  ;;  %v659_v27 = vld [vmem:[%s840_s3] ss:$0 sm:$0xff]  ;;  %v477_v28 = vld [vmem:[%s842_s5 + $0x18] sm:$0xff]  ;;  %v476_v30 = vld [vmem:[%s842_s5 + $0x10] sm:$0xff] }
  0x14   : > { %620 = vmatpush.msra.mxu2 %v487_v15  ;;  %621 = vmatpush.msra.mxu3 %v487_v15  ;;  %v660_v32 = vld [vmem:[%s841_s4] ss:$0 sm:$0xff]  ;;  %v475_v33 = vld [vmem:[%s842_s5 + $0x8] sm:$0xff] }
  0x15   : > { %497 = vmatpush.msra.mxu1 %v486_v16  ;;  %v474_v36 = vld [vmem:[%s842_s5] sm:$0xff] }
  0x16   : > { %622 = vmatpush.msra.mxu2 %v486_v16  ;;  %623 = vmatpush.msra.mxu3 %v486_v16 }
  0x17   : > { %319 = vperm.xlu1 %658, %v312_v9   ;;  %324 = vperm.xlu0 %657, %v313_v10  }
  0x18   : > { %498 = vmatpush.msra.mxu1 %v485_v17  ;;  %624 = vmatpush.msra.mxu2 %v485_v17 }
  0x19   : > { %625 = vmatpush.msra.mxu3 %v485_v17 }
  0x1a   : > { %499 = vmatpush.msra.mxu1 %v484_v18  ;;  %626 = vmatpush.msra.mxu2 %v484_v18 }
  0x1b   : > { %607 = vmatmul.msk.f32.gmra.mxu0 %vm344_vm0, %v305_v8  ;;  %627 = vmatpush.msra.mxu3 %v484_v18 }
  0x1c   : > { %500 = vmatpush.msra.mxu1 %v483_v19  ;;  %628 = vmatpush.msra.mxu2 %v483_v19 }
  0x1d   : > { %629 = vmatpush.msra.mxu3 %v483_v19 }
  0x1e   : > { %501 = vmatpush.msra.mxu1 %v482_v20  ;;  %630 = vmatpush.msra.mxu2 %v482_v20 }
  0x1f   : > { %631 = vmatpush.msra.mxu3 %v482_v20 }
  0x20   : > { %502 = vmatpush.msra.mxu1 %v481_v21  ;;  %632 = vmatpush.msra.mxu2 %v481_v21 }
  0x21   : > { %633 = vmatpush.msra.mxu3 %v481_v21 }
  0x22   : > { %503 = vmatpush.msra.mxu1 %v480_v23  ;;  %634 = vmatpush.msra.mxu2 %v480_v23 }
  0x23   : > { %608 = vmatmul.msk.f32.gmra.mxu0 %vm344_vm0, %v306_v11  ;;  %635 = vmatpush.msra.mxu3 %v480_v23 }
  0x24   : > { %504 = vmatpush.msra.mxu1 %v479_v24  ;;  %636 = vmatpush.msra.mxu2 %v479_v24 }
  0x25   : > { %637 = vmatpush.msra.mxu3 %v479_v24 }
  0x26   : > { %505 = vmatpush.msra.mxu1 %v478_v26  ;;  %638 = vmatpush.msra.mxu2 %v478_v26 }
  0x27   : > { %639 = vmatpush.msra.mxu3 %v478_v26 }
  0x28   : > { %506 = vmatpush.msra.mxu1 %v477_v28  ;;  %640 = vmatpush.msra.mxu2 %v477_v28 }
  0x29   : > { %641 = vmatpush.msra.mxu3 %v477_v28 }
  0x2a   : > { %507 = vmatpush.msra.mxu1 %v476_v30  ;;  %642 = vmatpush.msra.mxu2 %v476_v30 }
  0x2b   : > { %609 = vmatmul.msk.f32.gmra.mxu0 %vm344_vm0, %v307_v12  ;;  %643 = vmatpush.msra.mxu3 %v476_v30 }
  0x2c   : > { %508 = vmatpush.msra.mxu1 %v475_v33  ;;  %644 = vmatpush.msra.mxu2 %v475_v33 }
  0x2d   : > { %645 = vmatpush.msra.mxu3 %v475_v33 }
  0x2e   : > { %509 = vmatpush.msra.mxu1 %v474_v36  ;;  %646 = vmatpush.msra.mxu2 %v474_v36 }
  0x2f   : > { %647 = vmatpush.msra.mxu3 %v474_v36 }
  0x81   : > { %v335_v22 = vpop.permute.xlu1 %334  ;;  %v330_v25 = vpop.permute.xlu0 %329 }
  0x82   : > { %v342_v47 = vmul.f32 %v659_v27, %v330_v25  ;;  %v343_v55 = vmul.f32 %v659_v27, %v335_v22 }
  0x89   : > { %v320_v29 = vpop.permute.xlu1 %319  ;;  %v325_v37 = vpop.permute.xlu0 %324 }
  0x8a   : > { %v340_v31 = vmul.f32 %v659_v27, %v320_v29  ;;  %v341_v40 = vmul.f32 %v659_v27, %v325_v37 }
  0x90   : > { %v374_v34 = vpop.f32.mrf.mxu0 }
  0x91   : > { %v375_v35 = vadd.f32 %v374_v34, %v340_v31 }
  0x93   : > { %v390_v38 = vadd.f32 %v660_v32, %v375_v35 }
  0x95   : > { %v610_v39 = vmul.f32 -1.442695, %v390_v38 }
  0x97   : > { %662 = vpow2.f32 %v610_v39 }
  0x98   : > { %v377_v41 = vpop.f32.mrf.mxu0 }
  0x99   : > { %v378_v42 = vadd.f32 %v377_v41, %v341_v40 }
  0x9b   : > { %v391_v43 = vadd.f32 %v660_v32, %v378_v42 }
  0x9d   : > { %v663_v44 = vpop.eup %662  ;;  %v611_v45 = vmul.f32 -1.442695, %v391_v43 }
  0x9e   : > { %v406_v46 = vadd.f32 1.0, %v663_v44 }
  0x9f   : > { %664 = vpow2.f32 %v611_v45 }
  0xa0   : > { %666 = vrcp.f32 %v406_v46  ;;  %v380_v48 = vpop.f32.mrf.mxu0  ;;  %v421_v60 = vand.u32 2147483648, %v406_v46  ;;  %v419_v63 = vand.u32 2147483647, %v406_v46  ;;  %vm415_vm2 = vweird.f32 %v406_v46 }
  0xa1   : > { %v381_v49 = vadd.f32 %v380_v48, %v342_v47 }
  0xa2   : > { %v422_v5 = vor.u32 1.1754944e-38, %v421_v60  ;;  %vm420_vm4 = vcmp.eq.f32.partialorder %v419_v63, 8.507059e+37 }
  0xa3   : > { %v815_v50 = vadd.f32 %v660_v32, %v381_v49 }
  0xa5   : > { %v665_v51 = vpop.eup %664  ;;  %v612_v52 = vmul.f32 -1.442695, %v815_v50 }
  0xa6   : > { %v667_v53 = vpop.eup %666  ;;  %v407_v54 = vadd.f32 1.0, %v665_v51 }
  0xa7   : > { %668 = vpow2.f32 %v612_v52  ;;  %v411_v56 = vmul.f32 %v667_v53, %v406_v46  ;;  %vm416_vm1 = vweird.f32 %v667_v53 }
  0xa8   : > { %670 = vrcp.f32 %v407_v54  ;;  %v383_v57 = vpop.f32.mrf.mxu0  ;;  %vm417_vm3 = vmor %vm415_vm2, %vm416_vm1  ;;  %v436_v11 = vand.u32 2147483648, %v407_v54  ;;  %v434_v13 = vand.u32 2147483647, %v407_v54  ;;  %vm430_vm6 = vweird.f32 %v407_v54 }
  0xa9   : > { %v384_v58 = vadd.f32 %v383_v57, %v343_v55  ;;  %v412_v59 = vsub.f32 1.0, %v411_v56 }
  0xaa   : > { %v437_v18 = vor.u32 1.1754944e-38, %v436_v11  ;;  %vm435_vm8 = vcmp.eq.f32.partialorder %v434_v13, 8.507059e+37 }
  0xab   : > { %v818_v61 = vadd.f32 %v660_v32, %v384_v58  ;;  %v413_v62 = vmul.f32 %v667_v53, %v412_v59 }
  0xad   : > { %v669_v0 = vpop.eup %668  ;;  %v613_v1 = vmul.f32 -1.442695, %v818_v61  ;;  %v414_v2 = vadd.f32 %v667_v53, %v413_v62 }
  0xae   : > { %v671_v3 = vpop.eup %670  ;;  %v408_v4 = vadd.f32 1.0, %v669_v0 }
  0xaf   : > { %672 = vpow2.f32 %v613_v1  ;;  %v418_v6 = vsel %vm417_vm3, %v667_v53, %v414_v2  ;;  %v426_v7 = vmul.f32 %v671_v3, %v407_v54  ;;  %vm431_vm5 = vweird.f32 %v671_v3 }
  0xb0   : > { %674 = vrcp.f32 %v408_v4  ;;  %v423_v8 = vsel %vm420_vm4, %v422_v5, %v418_v6  ;;  %vm432_vm7 = vmor %vm430_vm6, %vm431_vm5  ;;  %v451_v24 = vand.u32 2147483648, %v408_v4  ;;  %v449_v26 = vand.u32 2147483647, %v408_v4 }
  0xb1   : > { %v470_v9 = vmul.f32 %v423_v8, %v390_v38  ;;  %v427_v10 = vsub.f32 1.0, %v426_v7  ;;  %vm445_vm10 = vweird.f32 %v408_v4 }
  0xb2   : > { %v452_v29 = vor.u32 1.1754944e-38, %v451_v24  ;;  %vm450_vm12 = vcmp.eq.f32.partialorder %v449_v26, 8.507059e+37 }
  0xb3   : > { %510 = vmatmul.f32.vlgmr.msra.gmra.mxu1 %v470_v9  ;;  %v428_v12 = vmul.f32 %v671_v3, %v427_v10 }
  0xb5   : > { %v673_v14 = vpop.eup %672  ;;  %v429_v15 = vadd.f32 %v671_v3, %v428_v12 }
  0xb6   : > { %v675_v16 = vpop.eup %674  ;;  %v409_v17 = vadd.f32 1.0, %v673_v14 }
  0xb7   : > { %v433_v19 = vsel %vm432_vm7, %v671_v3, %v429_v15  ;;  %v441_v20 = vmul.f32 %v675_v16, %v408_v4  ;;  %vm446_vm9 = vweird.f32 %v675_v16 }
  0xb8   : > { %676 = vrcp.f32 %v409_v17  ;;  %v438_v21 = vsel %vm435_vm8, %v437_v18, %v433_v19  ;;  %vm447_vm11 = vmor %vm445_vm10, %vm446_vm9  ;;  %v466_v35 = vand.u32 2147483648, %v409_v17  ;;  %v464_v37 = vand.u32 2147483647, %v409_v17 }
  0xb9   : > { %v471_v22 = vmul.f32 %v438_v21, %v391_v43  ;;  %v442_v23 = vsub.f32 1.0, %v441_v20  ;;  %vm460_vm14 = vweird.f32 %v409_v17  ;;  %v661_v43 = vld [vmem:[%s843_s6] ss:$0 sm:$0xff] }
  0xba   : > { %v467_v39 = vor.u32 1.1754944e-38, %v466_v35  ;;  %vm465_vm1 = vcmp.eq.f32.partialorder %v464_v37, 8.507059e+37 }
  0xbb   : > { %513 = vmatmul.f32.vlgmr.msra.gmra.mxu2 %v471_v22  ;;  %v443_v25 = vmul.f32 %v675_v16, %v442_v23 }
  0xbd   : > { %v444_v27 = vadd.f32 %v675_v16, %v443_v25 }
  0xbe   : > { %v677_v28 = vpop.eup %676 }
  0xbf   : > { %v448_v30 = vsel %vm447_vm11, %v675_v16, %v444_v27  ;;  %v456_v31 = vmul.f32 %v677_v28, %v409_v17  ;;  %vm461_vm13 = vweird.f32 %v677_v28 }
  0xc0   : > { %v453_v32 = vsel %vm450_vm12, %v452_v29, %v448_v30  ;;  %vm462_vm15 = vmor %vm460_vm14, %vm461_vm13 }
  0xc1   : > { %v472_v33 = vmul.f32 %v453_v32, %v815_v50  ;;  %v457_v34 = vsub.f32 1.0, %v456_v31 }
  0xc3   : > { %516 = vmatmul.f32.vlgmr.msra.gmra.mxu3 %v472_v33  ;;  %v458_v36 = vmul.f32 %v677_v28, %v457_v34 }
  0xc5   : > { %v459_v38 = vadd.f32 %v677_v28, %v458_v36 }
  0xc7   : > { %v463_v40 = vsel %vm462_vm15, %v677_v28, %v459_v38 }
  0xc8   : > { %v468_v41 = vsel %vm465_vm1, %v467_v39, %v463_v40 }
  0xc9   : > { %v473_v42 = vmul.f32 %v468_v41, %v818_v61 }
  0xcb   : > { %519 = vmatmul.f32.gmra.mxu3 %v473_v42 }
 0x130   : > { %v511_v44 = vpop.f32.mrf.mxu1 }
 0x131   : > { %v512_v45 = vadd.f32 %v661_v43, %v511_v44 }
 0x133   : > { %523 = vst.msk [vmem:[%s302_s17] sm:$0xff] %vm344_vm0, %v512_v45 }
 0x13e   : > { %v514_v46 = vpop.f32.mrf.mxu2 }
 0x13f   : > { %v515_v47 = vadd.f32 %v661_v43, %v514_v46 }
 0x141   : > { %524 = vst.msk [vmem:[%s302_s17 + $0x8] sm:$0xff] %vm344_vm0, %v515_v47 }
 0x146   : > { %v517_v48 = vpop.f32.mrf.mxu3 }
 0x147   : > { %v518_v49 = vadd.f32 %v661_v43, %v517_v48 }
 0x149   : > { %525 = vst.msk [vmem:[%s302_s17 + $0x10] sm:$0xff] %vm344_vm0, %v518_v49 }
 0x14e   : > { %v520_v50 = vpop.f32.mrf.mxu3 }
 0x14f   : > { %v521_v51 = vadd.f32 %v661_v43, %v520_v50 }
 0x151   : > { %526 = vst.msk [vmem:[%s302_s17 + $0x18] sm:$0xff] %vm344_vm0, %v521_v51 }
 0x152 PF: > { %s17_s24 = sadd.s32 1, %s684_s24  }
 0x153   : > { %p14_p4 = scmp.ge.s32.totalorder %s17_s24, 4  }
 0x155   :  { %16 = sbr.rel (!%p14_p4) target bundleno = 1 (0x1), region = 81 }

</bundles_post_ra>
